<compile_context>
chip_gen: v7x
topology: tpu7x:2x2x1
jax: 0.10.0
libtpu: 0.0.40
codegen_flags: <defaults>
</compile_context>

<pallas_src>
import functools
import math

import jax
import jax.numpy as jnp
from jax.experimental import pallas as pl
from jax.experimental.pallas import tpu as pltpu


def _kde_kernel(test_t_ref, train_ref, out_ref, m_scr, s_scr, tsq_scr, *,
                neg_half_scale, Z, n_train, tn):
    """One (test-tile i, train-tile j) grid step.

    test_t_ref : [D,  TM]  VMEM tile (resident across the j axis)
    train_ref  : [TN, D ]  VMEM tile (streamed over the j axis)
    out_ref    : [1,  TM]  VMEM tile (written once, at the last j step)
    m_scr      : [1,  TM]  running max of the online logsumexp
    s_scr      : [1,  TM]  running sum of exp(. - m)
    tsq_scr    : [1,  TM]  ||test||^2, computed once per test tile
    """
    j = pl.program_id(1)

    @pl.when(j == 0)
    def _init():
        m_scr[...] = jnp.full(m_scr.shape, -jnp.inf, dtype=jnp.float32)
        s_scr[...] = jnp.zeros(s_scr.shape, dtype=jnp.float32)
        tt = test_t_ref[...].astype(jnp.float32)                 # [D, TM]
        tsq_scr[...] = jnp.sum(tt * tt, axis=0, keepdims=True)   # [1, TM]

    train = train_ref[...].astype(jnp.float32)                   # [TN, D]

    if n_train % tn != 0:
        # Last train block overhangs the array: out-of-bounds sublanes hold
        # unspecified VMEM contents. Zero them (so the matmul stays finite)
        # and force their ||y||^2 to +inf so log_kern becomes -inf.
        row = jax.lax.broadcasted_iota(jnp.int32, (tn, 1), 0) + j * tn
        valid = row < n_train
        train = jnp.where(valid, train, 0.0)
        train_sq = jnp.sum(train * train, axis=-1, keepdims=True)
        train_sq = jnp.where(valid, train_sq, jnp.inf)            # [TN, 1]
    else:
        train_sq = jnp.sum(train * train, axis=-1, keepdims=True)

    # Cross term on the MXU: train @ test^T -> [TN, TM] (no transpose needed,
    # test is already stored [D, TM]).
    cross = jnp.dot(train, test_t_ref[...].astype(jnp.float32),
                    preferred_element_type=jnp.float32)           # [TN, TM]

    # ||x - y||^2 / h^2 * (-1/2), with clamp (sq >= 0) folded into a min.
    sq = train_sq + tsq_scr[...] - 2.0 * cross                    # [TN, TM]
    log_kern = jnp.minimum(neg_half_scale * sq, 0.0)

    # Online logsumexp over the train (sublane) axis.
    tile_max = jnp.max(log_kern, axis=0, keepdims=True)           # [1, TM]
    m_prev = m_scr[...]
    m_new = jnp.maximum(m_prev, tile_max)
    # Guard: if m_new is -inf (all contributions so far are -inf), use 0 in
    # the exponents so we produce exact zeros instead of NaN.
    m_safe = jnp.where(m_new == -jnp.inf, 0.0, m_new)
    alpha = jnp.exp(m_prev - m_safe)
    p = jnp.exp(log_kern - m_safe)
    s_scr[...] = alpha * s_scr[...] + jnp.sum(p, axis=0, keepdims=True)
    m_scr[...] = m_new

    @pl.when(j == pl.num_programs(1) - 1)
    def _finalize():
        lse = m_scr[...] + jnp.log(s_scr[...]) - Z                 # [1, TM]
        out_ref[...] = lse.astype(out_ref.dtype)


def _round_up(x, m):
    return (x + m - 1) // m * m


def kde_forward(test_Xs, train_Xs, bandwidth=1.0, *, tm=512, tn=512):
    """Pallas-backed equivalent of KernelDensityEstimator(train_Xs)(test_Xs)."""
    M, D = test_Xs.shape
    N, D2 = train_Xs.shape
    assert D == D2, "feature dims must match"

    h = float(bandwidth)
    Z = 0.5 * D * math.log(2.0 * math.pi) + D * math.log(h) + math.log(float(N))
    neg_half_scale = -0.5 / (h * h)

    # Tile sizes. Sublane dims must be multiples of 8 (or the full dim);
    # lane dims must be multiples of 128 unless a single tile covers the dim.
    tm = min(tm, _round_up(M, 8))
    tn = min(tn, _round_up(N, 8))
    if _round_up(M, 8) > tm and tm % 128 != 0:
        tm = _round_up(tm, 128)

    # Keep the double-buffered working set well inside VMEM (v7x: 64 MiB/core).
    def _footprint(tm_, tn_):
        return 4 * (2 * tn_ * D + 2 * D * tm_ + 8 * tm_)
    while tn > 8 and _footprint(tm, tn) > 24 * 1024 * 1024:
        tn //= 2

    n_m = pl.cdiv(M, tm)
    n_n = pl.cdiv(N, tn)
    Mp = n_m * tm

    # Test points: one cheap transpose+pad to [D, Mp] (lane-dense test axis).
    # Zero padding is harmless (independent lanes, sliced off at the end).
    test_t = jnp.zeros((D, Mp), jnp.float32).at[:, :M].set(
        test_Xs.astype(jnp.float32).T)
    # Train array is passed unpadded; the overhanging rows of the last block
    # (if any) are masked inside the kernel.
    train_f = train_Xs.astype(jnp.float32)

    kernel = functools.partial(_kde_kernel, neg_half_scale=neg_half_scale,
                               Z=Z, n_train=N, tn=tn)

    out = pl.pallas_call(
        kernel,
        out_shape=jax.ShapeDtypeStruct((1, Mp), jnp.float32),
        grid_spec=pltpu.PrefetchScalarGridSpec(
            num_scalar_prefetch=0,
            grid=(n_m, n_n),  # reduction (train) axis last
            in_specs=[
                pl.BlockSpec((D, tm), lambda i, j: (0, i)),    # test^T tile
                pl.BlockSpec((tn, D), lambda i, j: (j, 0)),    # train tile
            ],
            out_specs=pl.BlockSpec((1, tm), lambda i, j: (0, i)),
            scratch_shapes=[
                pltpu.VMEM((1, tm), jnp.float32),   # running max
                pltpu.VMEM((1, tm), jnp.float32),   # running sum
                pltpu.VMEM((1, tm), jnp.float32),   # ||test||^2
            ],
        ),
        compiler_params=pltpu.CompilerParams(
            dimension_semantics=("parallel", "arbitrary"),
            vmem_limit_bytes=32 * 1024 * 1024,
        ),
    )(test_t, train_f)

    return out[0, :M]  # [M]


def _kde_reference(test_Xs, train_Xs, bandwidth):
    """Pure-JAX transcription of GaussianKernel.forward for validation."""
    n, d = train_Xs.shape
    h = float(bandwidth)
    Z = 0.5 * d * math.log(2.0 * math.pi) + d * math.log(h) + math.log(float(n))
    diffs = (test_Xs[:, None, :] - train_Xs[None, :, :]) / h
    log_exp = -0.5 * jnp.sum(diffs * diffs, axis=-1)
    return jax.scipy.special.logsumexp(log_exp - Z, axis=-1)


# TODO(synk): KernelDensityEstimator.sample / GaussianKernel.sample (host-side
# random resampling of train rows + Gaussian noise) is not implemented here;
# only the forward (log-density) pass is a Pallas kernel.

if __name__ == "__main__":
    key = jax.random.PRNGKey(0)
    k1, k2, k3, k4 = jax.random.split(key, 4)

    ok = True

    # Case 1: nicely shaped small problem.
    M, N, D = 8, 16, 32
    train_Xs = jax.random.normal(k1, (N, D), dtype=jnp.float32)
    test_Xs = jax.random.normal(k2, (M, D), dtype=jnp.float32)
    for bw in (1.0, 0.7):
        log_probs = kde_forward(test_Xs, train_Xs, bandwidth=bw)
        jax.block_until_ready(log_probs)
        assert log_probs.shape == (M,)
        assert log_probs.dtype == jnp.float32
        expected = _kde_reference(test_Xs, train_Xs, bw)
        err = float(jnp.max(jnp.abs(log_probs - expected)))
        ok = ok and (err < 1e-3)

    # Case 2: ragged shapes (exercises the overhanging-train-block mask path).
    M2, N2, D2 = 12, 20, 7
    train_Xs2 = jax.random.normal(k3, (N2, D2), dtype=jnp.float32)
    test_Xs2 = jax.random.normal(k4, (M2, D2), dtype=jnp.float32)
    log_probs2 = kde_forward(test_Xs2, train_Xs2, bandwidth=1.3)
    jax.block_until_ready(log_probs2)
    expected2 = _kde_reference(test_Xs2, train_Xs2, 1.3)
    err2 = float(jnp.max(jnp.abs(log_probs2 - expected2)))
    ok = ok and (err2 < 1e-3) and log_probs2.shape == (M2,)

    assert ok, "Pallas KDE result does not match reference"
    print("KERNEL_OK")
</pallas_src>

<mosaic_0001>
module attributes {stable_mosaic.version = 11 : i64} {
  func.func @_kde_kernel(%arg0: i32, %arg1: i32, %arg2: memref<32x8xf32, #tpu.memory_space<vmem>>, %arg3: memref<16x32xf32, #tpu.memory_space<vmem>>, %arg4: memref<1x8xf32, #tpu.memory_space<vmem>>, %arg5: memref<1x8xf32, #tpu.memory_space<vmem>>, %arg6: memref<1x8xf32, #tpu.memory_space<vmem>>, %arg7: memref<1x8xf32, #tpu.memory_space<vmem>>) attributes {dimension_semantics = [#tpu.dimension_semantics<parallel>, #tpu.dimension_semantics<arbitrary>], iteration_bounds = array<i64: 1, 1>, scalar_prefetch = 0 : i64, scratch_operands = 3 : i64, tpu.core_type = #tpu.core_type<tc>, window_params = [{transform_indices = @transform_0, window_bounds = array<i64: 32, 8>}, {transform_indices = @transform_1, window_bounds = array<i64: 16, 32>}, {transform_indices = @transform_2, window_bounds = array<i64: 1, 8>}]} {
    %c0_i32 = arith.constant 0 : i32
    %0 = arith.cmpi eq, %arg1, %c0_i32 : i32
    %1 = arith.extui %0 : i1 to i32
    %c0_i32_0 = arith.constant 0 : i32
    %2 = arith.cmpi ne, %1, %c0_i32_0 : i32
    scf.if %2 {
      %cst_24 = arith.constant 0xFF800000 : f32
      %43 = vector.broadcast %cst_24 : f32 to vector<1x8xf32>
      %c0_25 = arith.constant 0 : index
      %c0_26 = arith.constant 0 : index
      %44 = vector.load %arg5[%c0_25, %c0_26] : memref<1x8xf32, #tpu.memory_space<vmem>>, vector<1x8xf32>
      tpu.vector_store %arg5[%c0_25, %c0_26], %43 {strides = array<i32>} : memref<1x8xf32, #tpu.memory_space<vmem>>, vector<1x8xf32>,
      %cst_27 = arith.constant 0.000000e+00 : f32
      %45 = vector.broadcast %cst_27 : f32 to vector<1x8xf32>
      %c0_28 = arith.constant 0 : index
      %c0_29 = arith.constant 0 : index
      %46 = vector.load %arg6[%c0_28, %c0_29] : memref<1x8xf32, #tpu.memory_space<vmem>>, vector<1x8xf32>
      tpu.vector_store %arg6[%c0_28, %c0_29], %45 {strides = array<i32>} : memref<1x8xf32, #tpu.memory_space<vmem>>, vector<1x8xf32>,
      %c0_30 = arith.constant 0 : index
      %c0_31 = arith.constant 0 : index
      %47 = vector.load %arg2[%c0_30, %c0_31] : memref<32x8xf32, #tpu.memory_space<vmem>>, vector<32x8xf32>
      %48 = arith.mulf %47, %47 : vector<32x8xf32>
      %cst_32 = arith.constant dense<0.000000e+00> : vector<8xf32>
      %49 = vector.multi_reduction <add>, %48, %cst_32 [0] : vector<32x8xf32> to vector<8xf32>
      %50 = vector.shape_cast %49 : vector<8xf32> to vector<1x8xf32>
      %c0_33 = arith.constant 0 : index
      %c0_34 = arith.constant 0 : index
      %51 = vector.load %arg7[%c0_33, %c0_34] : memref<1x8xf32, #tpu.memory_space<vmem>>, vector<1x8xf32>
      tpu.vector_store %arg7[%c0_33, %c0_34], %50 {strides = array<i32>} : memref<1x8xf32, #tpu.memory_space<vmem>>, vector<1x8xf32>,
    } else {
    }
    %c0 = arith.constant 0 : index
    %c0_1 = arith.constant 0 : index
    %3 = vector.load %arg3[%c0, %c0_1] : memref<16x32xf32, #tpu.memory_space<vmem>>, vector<16x32xf32>
    %4 = arith.mulf %3, %3 : vector<16x32xf32>
    %cst = arith.constant dense<0.000000e+00> : vector<16xf32>
    %5 = vector.multi_reduction <add>, %4, %cst [1] : vector<16x32xf32> to vector<16xf32>
    %6 = vector.shape_cast %5 : vector<16xf32> to vector<16x1xf32>
    %c0_2 = arith.constant 0 : index
    %c0_3 = arith.constant 0 : index
    %7 = vector.load %arg2[%c0_2, %c0_3] : memref<32x8xf32, #tpu.memory_space<vmem>>, vector<32x8xf32>
    %cst_4 = arith.constant dense<0.000000e+00> : vector<16x8xf32>
    %8 = tpu.matmul %3, %7, %cst_4 {dimension_numbers = #tpu.dot_dimension_numbers<[1], [0], [0], [1], [0, 0, 1, 1], [], []>} : vector<16x32xf32>, vector<32x8xf32>, vector<16x8xf32> -> vector<16x8xf32>
    %c0_5 = arith.constant 0 : index
    %c0_6 = arith.constant 0 : index
    %9 = vector.load %arg7[%c0_5, %c0_6] : memref<1x8xf32, #tpu.memory_space<vmem>>, vector<1x8xf32>
    %10 = vector.broadcast %6 : vector<16x1xf32> to vector<16x8xf32>
    %11 = vector.broadcast %9 : vector<1x8xf32> to vector<16x8xf32>
    %12 = arith.addf %10, %11 : vector<16x8xf32>
    %cst_7 = arith.constant 2.000000e+00 : f32
    %13 = vector.broadcast %cst_7 : f32 to vector<16x8xf32>
    %14 = arith.mulf %13, %8 : vector<16x8xf32>
    %15 = arith.subf %12, %14 : vector<16x8xf32>
    %cst_8 = arith.constant -5.000000e-01 : f32
    %16 = vector.broadcast %cst_8 : f32 to vector<16x8xf32>
    %17 = arith.mulf %16, %15 : vector<16x8xf32>
    %cst_9 = arith.constant 0.000000e+00 : f32
    %18 = vector.broadcast %cst_9 : f32 to vector<16x8xf32>
    %19 = arith.minimumf %17, %18 : vector<16x8xf32>
    %cst_10 = arith.constant dense<0xFF800000> : vector<8xf32>
    %20 = vector.multi_reduction <maximumf>, %19, %cst_10 [0] : vector<16x8xf32> to vector<8xf32>
    %21 = vector.shape_cast %20 : vector<8xf32> to vector<1x8xf32>
    %c0_11 = arith.constant 0 : index
    %c0_12 = arith.constant 0 : index
    %22 = vector.load %arg5[%c0_11, %c0_12] : memref<1x8xf32, #tpu.memory_space<vmem>>, vector<1x8xf32>
    %23 = arith.maximumf %22, %21 : vector<1x8xf32>
    %cst_13 = arith.constant 0xFF800000 : f32
    %24 = vector.broadcast %cst_13 : f32 to vector<1x8xf32>
    %25 = arith.cmpf oeq, %23, %24 : vector<1x8xf32>
    %cst_14 = arith.constant 0.000000e+00 : f32
    %26 = vector.broadcast %cst_14 : f32 to vector<1x8xf32>
    %27 = arith.select %25, %26, %23 : vector<1x8xi1>, vector<1x8xf32>
    %28 = arith.subf %22, %27 : vector<1x8xf32>
    %29 = math.exp %28 : vector<1x8xf32>
    %30 = vector.broadcast %27 : vector<1x8xf32> to vector<16x8xf32>
    %31 = arith.subf %19, %30 : vector<16x8xf32>
    %32 = math.exp %31 : vector<16x8xf32>
    %c0_15 = arith.constant 0 : index
    %c0_16 = arith.constant 0 : index
    %33 = vector.load %arg6[%c0_15, %c0_16] : memref<1x8xf32, #tpu.memory_space<vmem>>, vector<1x8xf32>
    %34 = arith.mulf %29, %33 : vector<1x8xf32>
    %cst_17 = arith.constant dense<0.000000e+00> : vector<8xf32>
    %35 = vector.multi_reduction <add>, %32, %cst_17 [0] : vector<16x8xf32> to vector<8xf32>
    %36 = vector.shape_cast %35 : vector<8xf32> to vector<1x8xf32>
    %37 = arith.addf %34, %36 : vector<1x8xf32>
    %c0_18 = arith.constant 0 : index
    %c0_19 = arith.constant 0 : index
    %38 = vector.load %arg6[%c0_18, %c0_19] : memref<1x8xf32, #tpu.memory_space<vmem>>, vector<1x8xf32>
    tpu.vector_store %arg6[%c0_18, %c0_19], %37 {strides = array<i32>} : memref<1x8xf32, #tpu.memory_space<vmem>>, vector<1x8xf32>,
    %c0_20 = arith.constant 0 : index
    %c0_21 = arith.constant 0 : index
    %39 = vector.load %arg5[%c0_20, %c0_21] : memref<1x8xf32, #tpu.memory_space<vmem>>, vector<1x8xf32>
    tpu.vector_store %arg5[%c0_20, %c0_21], %23 {strides = array<i32>} : memref<1x8xf32, #tpu.memory_space<vmem>>, vector<1x8xf32>,
    %c0_i32_22 = arith.constant 0 : i32
    %40 = arith.cmpi eq, %arg1, %c0_i32_22 : i32
    %41 = arith.extui %40 : i1 to i32
    %c0_i32_23 = arith.constant 0 : i32
    %42 = arith.cmpi ne, %41, %c0_i32_23 : i32
    scf.if %42 {
      %c0_24 = arith.constant 0 : index
      %c0_25 = arith.constant 0 : index
      %43 = vector.load %arg5[%c0_24, %c0_25] : memref<1x8xf32, #tpu.memory_space<vmem>>, vector<1x8xf32>
      %c0_26 = arith.constant 0 : index
      %c0_27 = arith.constant 0 : index
      %44 = vector.load %arg6[%c0_26, %c0_27] : memref<1x8xf32, #tpu.memory_space<vmem>>, vector<1x8xf32>
      %45 = math.log %44 : vector<1x8xf32>
      %46 = arith.addf %43, %45 : vector<1x8xf32>
      %cst_28 = arith.constant 32.1786232 : f32
      %47 = vector.broadcast %cst_28 : f32 to vector<1x8xf32>
      %48 = arith.subf %46, %47 : vector<1x8xf32>
      %c0_29 = arith.constant 0 : index
      %c0_30 = arith.constant 0 : index
      %49 = vector.load %arg4[%c0_29, %c0_30] : memref<1x8xf32, #tpu.memory_space<vmem>>, vector<1x8xf32>
      tpu.vector_store %arg4[%c0_29, %c0_30], %48 {strides = array<i32>} : memref<1x8xf32, #tpu.memory_space<vmem>>, vector<1x8xf32>,
    } else {
    }
    return
  }
  func.func @transform_0(%arg0: i32, %arg1: i32) -> (i32, i32) {
    %c0_i32 = arith.constant 0 : i32
    %c0_i32_0 = arith.constant 0 : i32
    return %c0_i32, %arg0 : i32, i32
  }
  func.func @transform_1(%arg0: i32, %arg1: i32) -> (i32, i32) {
    %c0_i32 = arith.constant 0 : i32
    %c0_i32_0 = arith.constant 0 : i32
    return %arg1, %c0_i32 : i32, i32
  }
  func.func @transform_2(%arg0: i32, %arg1: i32) -> (i32, i32) {
    %c0_i32 = arith.constant 0 : i32
    %c0_i32_0 = arith.constant 0 : i32
    return %c0_i32, %arg0 : i32, i32
  }
}

</mosaic_0001>

<bundles_post_ra>
// kernel: tpu_custom_call.1
= control target key start
LH: loop header
LB: loop body
LE: loop exit
PB: predicated region body
PF: predicated region fallthrough
CT: control target
= control target key end

     0   :  { %vm46_vm0 = vcmask 261120   ;;  %s353_s0 = inlined_call_operand.vmem [shape: f32[32,8], index: 0, kind: input, shape index: {}]   ;;  %s354_s1 = inlined_call_operand.vmem [shape: f32[16,32], index: 1, kind: input, shape index: {}]   ;;  %s355_s2 = inlined_call_operand.hbm [shape: f32[1,8], index: 2, kind: output, shape index: {}]  }
   0x1   :  { %v53_v0 = vld [vmem:[%s353_s0] sm:$0xff]  ;;  %v54_v1 = vld [vmem:[%s353_s0 + $0x8] sm:$0xff]  ;;  %v55_v2 = vld [vmem:[%s353_s0 + $0x10] sm:$0xff] }
   0x2   :  { %v244_v3 = vpack.c.bf16 %v54_v1, %v53_v0  ;;  %v56_v4 = vld [vmem:[%s353_s0 + $0x18] sm:$0xff]  ;;  %v42_v5 = vld [vmem:[%s354_s1] sm:$0xff]  ;;  %v43_v6 = vld [vmem:[%s354_s1 + $0x8] sm:$0xff] }
   0x3   :  { %v248_v7 = vpack.c.bf16 %v56_v4, %v55_v2  ;;  %v44_v8 = vmul.f32 %v42_v5, %v42_v5  ;;  %241 = vmatprep.mubr.msk.f32.mxu0 %vm46_vm0, %v42_v5  ;;  %v45_v9 = vmul.f32 %v43_v6, %v43_v6 }
   0x4   :  { %7 = vsyncpa [#allocation6], 0  ;;  %245 = vmatprep.subr.bf16.mxu0 %v244_v3  ;;  %v23_v12 = vmul.f32 %v53_v0, %v53_v0  ;;  %v24_v13 = vmul.f32 %v54_v1, %v54_v1  ;;  %v25_v14 = vmul.f32 %v55_v2, %v55_v2  ;;  %v26_v15 = vmul.f32 %v56_v4, %v56_v4  ;;  %s289_s0 = smov [#allocation5]  }
   0x5   :  { %247 = vmatpush3.bf16.msra.mxu0 %v244_v3  ;;  %v47_v10 = vsel %vm46_vm0, %v44_v8, 0.0  ;;  %v50_v11 = vsel %vm46_vm0, %v45_v9, 0.0  ;;  %vm27_vm1 = vcmask 64512   ;;  %vm16_vm2 = vcmask 57344   ;;  %s215_s1 = sshll.u32 %s289_s0, 4  ;;  %s216_s1 = int_to_ptr.vmem [resolvable:$true] %s215_s1 }
   0x6   :  { %249 = vmatprep.subr.bf16.mxu0 %v248_v7  ;;  %48 = vadd.xlane.f32.xlu0 %v47_v10  ;;  %v28_v16 = vsel %vm27_vm1, %v23_v12, 0.0  ;;  %v29_v17 = vsel %vm27_vm1, %v24_v13, 0.0  ;;  %v31_v18 = vsel %vm27_vm1, %v25_v14, 0.0  ;;  %v33_v20 = vsel %vm27_vm1, %v26_v15, 0.0  ;;  %s263_s21 = scalar_lea.vmem %s216_s1, 16  ;;  %s267_s22 = scalar_lea.vmem %s216_s1, 32 }
   0x7   :  { %v30_v19 = vadd.f32 %v29_v17, %v28_v16  ;;  %v287_v29 = vmov -inf   ;;  %v288_v30 = vmov 0.0   ;;  %v173_v52 = vlaneseq  ;;  %p264_p0 = scmp.ne.s32.totalorder %s216_s1, %s263_s21  ;;  %p268_p1 = scmp.lt.s32.totalorder %s216_s1, %s216_s1 }
   0x8   :  { %17 = vst.msk [vmem:[#allocation2] sm:$0x1] %vm16_vm2, %v287_v29  ;;  %18 = vst.msk [vmem:[#allocation3] sm:$0x1] %vm16_vm2, %v288_v30  ;;  %p269_p2 = scmp.lt.s32.totalorder %s267_s22, %s263_s21 }
   0x9   :  { %251 = vmatpush3.bf16.msra.mxu0 %v248_v7  ;;  %v32_v21 = vadd.f32 %v31_v18, %v30_v19  ;;  %v174_v55 = vshrl.u32 %v173_v52, 7 }
   0xa   :  { %51 = vadd.xlane.f32.xlu0 %v50_v11  ;;  %p270_p3 = por %p269_p2, %p268_p1 }
   0xb   :  { %v34_v22 = vadd.f32 %v33_v20, %v32_v21  ;;  %v175_v59 = vsub.s32 0, %v174_v55 }
   0xc   :  { %242 = vmatmul.mubr.msk.f32.vlgmr.msra.gmra.mrb[0].mxu0 %vm46_vm0, %v43_v6  ;;  %p271_p4 = pnand %p270_p3, %p264_p0 }
   0xd   :  { %v35_v23 = vrot.slane %v34_v22, 4 }
   0xf   :  { %v36_v24 = vadd.f32 %v35_v23, %v34_v22  ;;  %v165_v56 = vld [vmem:[#allocation2] sm:$0x1]  ;;  %v184_v14 = vld [vmem:[#allocation3] sm:$0x1] }
  0x11   :  { %v37_v25 = vrot.slane %v36_v24, 2 }
  0x13   :  { %v38_v26 = vadd.f32 %v37_v25, %v36_v24 }
  0x15   :  { %v39_v27 = vrot.slane %v38_v26, 1 }
  0x17   :  { %v40_v28 = vadd.f32 %v39_v27, %v38_v26 }
  0x19   :  { %41 = vst.msk [vmem:[#allocation4] sm:$0x1] %vm16_vm2, %v40_v28 }
  0x20   :  { %v225_v33 = vld [vmem:[#allocation4] ss:$0 sm:$0xff] }
  0x93   :  { %v49_v31 = vpop.xlane.xlu0 %48 }
  0x94   :  { %v145_v38 = vadd.f32 %v225_v33, %v49_v31 }
  0x97   :  { %v52_v32 = vpop.xlane.xlu0 %51 }
  0x98   :  { %v146_v34 = vadd.f32 %v225_v33, %v52_v32 }
  0xdf   :  { %v243_v35 = vpop.f32.mrb[0].mxu0 }
  0xe0   :  { %v148_v36 = vmul.f32 2.0, %v243_v35  ;;  %v129_v37 = vpop.f32.mrb[1].mxu0 }
  0xe1   :  { %v147_v39 = vmul.f32 2.0, %v129_v37 }
  0xe2   :  { %v150_v40 = vsub.f32 %v146_v34, %v148_v36 }
  0xe3   :  { %v149_v41 = vsub.f32 %v145_v38, %v147_v39 }
  0xe4   :  { %v152_v42 = vmul.f32 -0.5, %v150_v40 }
  0xe5   :  { %v151_v43 = vmul.f32 -0.5, %v149_v41 }
  0xe6   :  { %v154_v44 = vmin.f32 %v152_v42, 0.0 }
  0xe7   :  { %v153_v45 = vmin.f32 %v151_v43, 0.0 }
  0xe8   :  { %v157_v46 = vsel %vm27_vm1, %v154_v44, -inf }
  0xe9   :  { %v156_v47 = vsel %vm27_vm1, %v153_v45, -inf }
  0xea   :  { %v158_v48 = vmax.f32 %v156_v47, %v157_v46 }
  0xec   :  { %v159_v49 = vrot.slane %v158_v48, 4 }
  0xee   :  { %v160_v50 = vmax.f32 %v158_v48, %v159_v49 }
  0xf0   :  { %v161_v51 = vrot.slane %v160_v50, 2 }
  0xf2   :  { %v162_v53 = vmax.f32 %v160_v50, %v161_v51 }
  0xf4   :  { %v163_v54 = vrot.slane %v162_v53, 1 }
  0xf6   :  { %v164_v57 = vmax.f32 %v162_v53, %v163_v54 }
  0xf8   :  { %v166_v58 = vmax.f32 %v165_v56, %v164_v57 }
  0xfa   :  { %vm167_vm3 = vcmp.eq.f32.partialorder %v166_v58, -inf  ;;  %198 = vst.msk [vmem:[#allocation2] sm:$0x1] %vm16_vm2, %v166_v58 }
  0xfb   :  { %v168_v60 = vsel %vm167_vm3, 0.0, %v166_v58 }
  0xfc   :  { %v176_v61 = vrot.slane %v168_v60, %v175_v59  ;;  %v169_v2 = vsub.f32 %v165_v56, %v168_v60 }
  0xfe   :  { %v178_v62 = vsub.f32 %v153_v45, %v176_v61  ;;  %v179_v63 = vsub.f32 %v154_v44, %v176_v61  ;;  %v170_v3 = vmul.f32 1.442695, %v169_v2 }
 0x100   :  { %v180_v0 = vmul.f32 1.442695, %v178_v62  ;;  %v182_v1 = vmul.f32 1.442695, %v179_v63 }
 0x101   :  { %v202_v22 = vld [vmem:[#allocation2] sm:$0x1] }
 0x102   :  { %255 = vpow2.f32 %v180_v0 }
 0x103   :  { %257 = vpow2.f32 %v182_v1 }
 0x104   :  { %259 = vpow2.f32 %v170_v3 }
 0x10c   :  { %v256_v4 = vpop.eup %255 }
 0x10d   :  { %v258_v5 = vpop.eup %257  ;;  %v186_v6 = vsel %vm27_vm1, %v256_v4, 0.0 }
 0x10e   :  { %v187_v7 = vsel %vm27_vm1, %v258_v5, 0.0  ;;  %v260_v13 = vpop.eup %259 }
 0x10f   :  { %v188_v8 = vadd.f32 %v187_v7, %v186_v6  ;;  %v185_v16 = vmul.f32 %v260_v13, %v184_v14 }
 0x111   :  { %v189_v9 = vrot.slane %v188_v8, 4 }
 0x113   :  { %v190_v10 = vadd.f32 %v189_v9, %v188_v8 }
 0x115   :  { %v191_v11 = vrot.slane %v190_v10, 2 }
 0x117   :  { %v192_v12 = vadd.f32 %v191_v11, %v190_v10 }
 0x119   :  { %v193_v15 = vrot.slane %v192_v12, 1 }
 0x11b   :  { %v194_v17 = vadd.f32 %v193_v15, %v192_v12 }
 0x11d   :  { %v195_v18 = vadd.f32 %v194_v17, %v185_v16 }
 0x11f   :  { %197 = vst.msk [vmem:[#allocation3] sm:$0x1] %vm16_vm2, %v195_v18 }
 0x126   :  { %v203_v19 = vld [vmem:[#allocation3] sm:$0x1] }
 0x127   :  { %261 = vlog2.f32 %v203_v19 }
 0x131   :  { %v262_v20 = vpop.eup %261 }
 0x132   :  { %v205_v21 = vmul.f32 0.6931472, %v262_v20 }
 0x134   :  { %v206_v23 = vadd.f32 %v205_v21, %v202_v22 }
 0x136   :  { %v226_v24 = vadd.f32 -32.178623, %v206_v23 }
 0x138   :  { %208 = vst.msk [vmem:[#allocation5] sm:$0x1] %vm16_vm2, %v226_v24 }
 0x139   :  { %274 = shalt.err (!%p271_p4)
}
 0x13a   :  { %s275_s25 = scalar_lea.hbm %s355_s2, 16 }
 0x13b   :  { %p276_p5 = scmp.ne.s32.totalorder %s355_s2, %s275_s25  ;;  %p279_p6 = scmp.lt.u32.totalorder %s275_s25, %s355_s2 }
 0x13d   :  { %p281_p7 = pnand %p279_p6, %p276_p5 }
 0x13f   :  { %284 = shalt.err (!%p281_p7)
}
 0x140   :  { %218 = dma.vmem_to_hbm [thread:$0]  %s216_s1, 16, %s355_s2, [#allocation6]  }
 0x141   :  { %285 = dma.done.wait [#allocation6], 16  }
 0x142   :  { %286 = vsyncadd [#allocation6], 4294967280 }
 0x143   :  { %222 = vsyncpa [#allocation6], 1 }

</bundles_post_ra>
